<compile_context>
chip_gen: v6e
topology: v6e:2x2x1
jax: 0.10.0
libtpu: 0.0.40
codegen_flags: <defaults>
</compile_context>

<pallas_src>
import jax
import jax.numpy as jnp
from jax.experimental import pallas as pl
from jax.experimental.pallas import tpu as pltpu


_LANES = 128
_REAL_BYTES_PER_TILE = 4 * 1024 * 1024   # ~4 MiB of real x bytes per grid step


def _fused_logreg_kernel(x_ref, w_ref, b_ref, o_ref):
    # x_ref: (TR, 128) lane-dense slab (native dtype)  | w_ref: (128, SPR) f32
    # b_ref: (1, 1) f32 scalar in SMEM                 | o_ref: (TR, SPR) f32
    x = x_ref[...].astype(jnp.float32)          # in-kernel upcast (bf16 sources)
    z = jnp.dot(x, w_ref[...], preferred_element_type=jnp.float32) + b_ref[0, 0]
    # sigmoid via EUP exp + EUP approx reciprocal (keeps the VALU free)
    y = pl.reciprocal(1.0 + jnp.exp(-z), approx=True)
    o_ref[...] = y.astype(o_ref.dtype)


def logistic_reg_forward(x, w1, b1, w2, b2):
    """x: (B, F); w1: (F, H); b1: (1, H); w2: (H, 1); b2: (1, 1)  ->  (B, 1)."""
    B, F = x.shape

    # --- exact fusion of the two linear layers (no inter-layer nonlinearity) ---
    w_eff = (w1 @ w2).reshape(F).astype(jnp.float32)             # (F,)
    b_eff = (b1 @ w2 + b2).reshape(1, 1).astype(jnp.float32)     # scalar via SMEM

    # --- lane-dense packing: Fp | 128 features per sample, spr samples / row ---
    fp = 1
    while fp < F:
        fp *= 2
    # TODO(synk): F > 128 would need a multi-row-per-sample contraction; this
    # model (breast-cancer split VFL, F <= 30) never hits it.
    assert fp <= _LANES, "logistic_reg_forward supports no_input_features <= 128"
    spr = _LANES // fp                                           # samples per slab row

    if fp != F:
        x = jnp.pad(x, ((0, 0), (0, fp - F)))                    # zero feature pad
    w_pad = jnp.zeros((fp,), jnp.float32).at[:F].set(w_eff)
    # Block-structured contraction weight: W_sel[j*fp + f, j] = w_eff[f]
    w_sel = jnp.kron(jnp.eye(spr, dtype=jnp.float32), w_pad.reshape(fp, 1))  # (128, spr)

    # --- tile sizing from REAL slab bytes (slab rows are fully lane-dense) ---
    n_rows = pl.cdiv(B, spr)                                     # slab rows needed
    row_bytes = _LANES * x.dtype.itemsize
    tr_target = max(8, (_REAL_BYTES_PER_TILE // row_bytes) // 8 * 8)   # 8192 for f32

    grid = max(1, pl.cdiv(n_rows, tr_target))
    if n_rows >= 4096:              # enough data to feed both v7x TensorCores
        grid = max(grid, 2)
    if grid == 1:
        tr = n_rows                 # single full-array block: no (8,128) padding at all
    else:
        tr = pl.cdiv(pl.cdiv(n_rows, grid), 8) * 8
    r_pad = grid * tr
    b_pad = r_pad * spr

    if b_pad != B:
        x = jnp.pad(x, ((0, b_pad - B), (0, 0)))
    # Free reshape of contiguous data; native dtype kept (no wrapper astype).
    x_slab = x.reshape(r_pad, _LANES)

    out = pl.pallas_call(
        _fused_logreg_kernel,
        out_shape=jax.ShapeDtypeStruct((r_pad, spr), jnp.float32),
        grid_spec=pl.GridSpec(
            grid=(grid,),
            in_specs=[
                pl.BlockSpec((tr, _LANES), lambda i: (i, 0)),          # x slab tile
                pl.BlockSpec((_LANES, spr), lambda i: (0, 0)),         # W_sel (resident)
                pl.BlockSpec(memory_space=pltpu.MemorySpace.SMEM),     # fused bias
            ],
            out_specs=pl.BlockSpec((tr, spr), lambda i: (i, 0)),
        ),
        compiler_params=pltpu.CompilerParams(
            dimension_semantics=("parallel",),      # shard tiles over v7x's 2 TCs
            vmem_limit_bytes=32 * 1024 * 1024,      # ~8.5 MiB used; safe on v5e/v6e/v7x
        ),
    )(x_slab, w_sel, b_eff)

    # (r_pad, spr) flattens row-major in exact sample order.
    return out.reshape(b_pad, 1)[:B]


def init_params(key, no_input_features, hidden=20):
    """Deterministic init mirroring torch.nn.Linear (uniform +/- 1/sqrt(fan_in)).
    Weights stored as (in, out) so the math is x @ W + b."""
    k1, k2, k3, k4 = jax.random.split(key, 4)
    bound1 = 1.0 / jnp.sqrt(jnp.float32(no_input_features))
    bound2 = 1.0 / jnp.sqrt(jnp.float32(hidden))
    w1 = jax.random.uniform(k1, (no_input_features, hidden), jnp.float32,
                            minval=-bound1, maxval=bound1)
    b1 = jax.random.uniform(k2, (1, hidden), jnp.float32,
                            minval=-bound1, maxval=bound1)
    w2 = jax.random.uniform(k3, (hidden, 1), jnp.float32,
                            minval=-bound2, maxval=bound2)
    b2 = jax.random.uniform(k4, (1, 1), jnp.float32,
                            minval=-bound2, maxval=bound2)
    return w1, b1, w2, b2


if __name__ == "__main__":
    key = jax.random.PRNGKey(0)
    kx, kp = jax.random.split(key)

    batch = 8
    no_input_features = 16   # one party's half of the 30 breast-cancer features (split VFL)

    x = jax.random.normal(kx, (batch, no_input_features), jnp.float32)
    w1, b1, w2, b2 = init_params(kp, no_input_features)

    y = jax.block_until_ready(logistic_reg_forward(x, w1, b1, w2, b2))

    # plain-JAX reference (unfused, highest-precision dots)
    hp = jax.lax.Precision.HIGHEST
    h = jnp.dot(x, w1, precision=hp) + b1
    ref = 1.0 / (1.0 + jnp.exp(-(jnp.dot(h, w2, precision=hp) + b2)))

    assert y.shape == (batch, 1)
    err = jnp.max(jnp.abs(y - ref))
    # tolerance covers MXU default-precision matmul + EUP approx reciprocal
    assert jnp.allclose(y, ref, atol=5e-3, rtol=5e-3), f"max abs err {err}"

    print("KERNEL_OK")
</pallas_src>

<mosaic_0001>
module attributes {stable_mosaic.version = 11 : i64} {
  func.func @_fused_logreg_kernel(%arg0: i32, %arg1: memref<1x128xf32, #tpu.memory_space<vmem>>, %arg2: memref<128x8xf32, #tpu.memory_space<vmem>>, %arg3: memref<1x1xf32, #tpu.memory_space<smem>>, %arg4: memref<1x8xf32, #tpu.memory_space<vmem>>) attributes {dimension_semantics = [#tpu.dimension_semantics<parallel>], iteration_bounds = array<i64: 1>, scalar_prefetch = 0 : i64, scratch_operands = 0 : i64, tpu.core_type = #tpu.core_type<tc>, window_params = [{transform_indices = @transform_0, window_bounds = array<i64: 1, 128>}, {pipeline_mode = #tpu.pipeline_mode<synchronous>, transform_indices = @transform_1, window_bounds = array<i64: 128, 8>}, {transform_indices = @transform_2, window_bounds = array<i64: 1, 1>}, {transform_indices = @transform_3, window_bounds = array<i64: 1, 8>}]} {
    %c0 = arith.constant 0 : index
    %c0_0 = arith.constant 0 : index
    %0 = vector.load %arg1[%c0, %c0_0] : memref<1x128xf32, #tpu.memory_space<vmem>>, vector<1x128xf32>
    %c0_1 = arith.constant 0 : index
    %c0_2 = arith.constant 0 : index
    %1 = vector.load %arg2[%c0_1, %c0_2] : memref<128x8xf32, #tpu.memory_space<vmem>>, vector<128x8xf32>
    %cst = arith.constant dense<0.000000e+00> : vector<1x8xf32>
    %2 = tpu.matmul %0, %1, %cst {dimension_numbers = #tpu.dot_dimension_numbers<[1], [0], [0], [1], [0, 0, 1, 1], [], []>} : vector<1x128xf32>, vector<128x8xf32>, vector<1x8xf32> -> vector<1x8xf32>
    %c0_3 = arith.constant 0 : index
    %c0_4 = arith.constant 0 : index
    %3 = memref.load %arg3[%c0_3, %c0_4] : memref<1x1xf32, #tpu.memory_space<smem>>
    %4 = vector.broadcast %3 : f32 to vector<1x8xf32>
    %5 = arith.addf %2, %4 : vector<1x8xf32>
    %cst_5 = arith.constant 0.000000e+00 : f32
    %6 = vector.broadcast %cst_5 : f32 to vector<1x8xf32>
    %7 = arith.subf %6, %5 : vector<1x8xf32>
    %8 = math.exp %7 : vector<1x8xf32>
    %cst_6 = arith.constant 1.000000e+00 : f32
    %9 = vector.broadcast %cst_6 : f32 to vector<1x8xf32>
    %10 = arith.addf %9, %8 : vector<1x8xf32>
    %11 = tpu.reciprocal %10 {approx = true} : vector<1x8xf32> -> vector<1x8xf32>
    %c0_7 = arith.constant 0 : index
    %c0_8 = arith.constant 0 : index
    %12 = vector.load %arg4[%c0_7, %c0_8] : memref<1x8xf32, #tpu.memory_space<vmem>>, vector<1x8xf32>
    tpu.vector_store %arg4[%c0_7, %c0_8], %11 {strides = array<i32>} : memref<1x8xf32, #tpu.memory_space<vmem>>, vector<1x8xf32>,
    return
  }
  func.func @transform_0(%arg0: i32) -> (i32, i32) {
    %c0_i32 = arith.constant 0 : i32
    %c0_i32_0 = arith.constant 0 : i32
    return %arg0, %c0_i32 : i32, i32
  }
  func.func @transform_1(%arg0: i32) -> (i32, i32) {
    %c0_i32 = arith.constant 0 : i32
    %c0_i32_0 = arith.constant 0 : i32
    %c0_i32_1 = arith.constant 0 : i32
    return %c0_i32, %c0_i32_0 : i32, i32
  }
  func.func @transform_2(%arg0: i32) -> (i32, i32) {
    %c0_i32 = arith.constant 0 : i32
    %c0_i32_0 = arith.constant 0 : i32
    %c0_i32_1 = arith.constant 0 : i32
    return %c0_i32, %c0_i32_0 : i32, i32
  }
  func.func @transform_3(%arg0: i32) -> (i32, i32) {
    %c0_i32 = arith.constant 0 : i32
    %c0_i32_0 = arith.constant 0 : i32
    return %arg0, %c0_i32 : i32, i32
  }
}

</mosaic_0001>

<bundles_post_ra>
// kernel: tpu_custom_call.1
= control target key start
LH: loop header
LB: loop body
LE: loop exit
PB: predicated region body
PF: predicated region fallthrough
CT: control target
= control target key end

     0   :  { %v207_v1 = vmov 0.0   ;;  %vm208_vm0 = vmmov 0   ;;  %s287_s0 = inlined_call_operand.vmem [shape: f32[1,128], index: 0, kind: input, shape index: {}]   ;;  %s288_s1 = inlined_call_operand.vmem [shape: f32[128,8], index: 1, kind: input, shape index: {}]   ;;  %s289_s2 = inlined_call_operand.<no memory space> [shape: f32[1,1], index: 2, kind: input, shape index: {}]   ;;  %s290_s3 = inlined_call_operand.hbm [shape: f32[1,8], index: 3, kind: output, shape index: {}]  }
   0x1   :  { %v32_v0 = vld [vmem:[%s288_s1 + $0x78] sm:$0xff]  ;;  %143 = vmatprep.subr.mxu0 %v207_v1  ;;  %v31_v2 = vld [vmem:[%s288_s1 + $0x70] sm:$0xff]  ;;  %175 = vmatprep.mubr.msk.f32.mxu0 %vm208_vm0, %v207_v1  ;;  %v30_v3 = vld [vmem:[%s288_s1 + $0x68] sm:$0xff] }
   0x2   :  { %144 = vmatpush3.msra.mxu0 %v32_v0  ;;  %v29_v4 = vld [vmem:[%s288_s1 + $0x60] sm:$0xff] }
   0x3   :  { %145 = vmatprep.subr.mxu0 %v207_v1 }
   0x4   :  { %146 = vmatpush3.msra.mxu0 %v31_v2 }
   0x5   :  { %147 = vmatprep.subr.mxu0 %v207_v1 }
   0x6   :  { %9 = vsyncpa [#allocation4], 0  ;;  %148 = vmatpush3.msra.mxu0 %v30_v3  ;;  %v28_v5 = vld [vmem:[%s288_s1 + $0x58] sm:$0xff]  ;;  %v27_v6 = vld [vmem:[%s288_s1 + $0x50] sm:$0xff]  ;;  %v34_v18 = vstv %s289_s2  ;;  %vm110_vm1 = vcmask 57344  }
   0x7   :  { %149 = vmatprep.subr.mxu0 %v207_v1  ;;  %v26_v7 = vld [vmem:[%s288_s1 + $0x48] sm:$0xff]  ;;  %v25_v8 = vld [vmem:[%s288_s1 + $0x40] sm:$0xff]  ;;  %v24_v9 = vld [vmem:[%s288_s1 + $0x38] sm:$0xff] }
   0x8   :  { %150 = vmatpush3.msra.mxu0 %v29_v4  ;;  %v23_v10 = vld [vmem:[%s288_s1 + $0x30] sm:$0xff]  ;;  %v22_v11 = vld [vmem:[%s288_s1 + $0x28] sm:$0xff]  ;;  %v21_v12 = vld [vmem:[%s288_s1 + $0x20] sm:$0xff] }
   0x9   :  { %151 = vmatprep.subr.mxu0 %v207_v1  ;;  %v20_v13 = vld [vmem:[%s288_s1 + $0x18] sm:$0xff]  ;;  %v19_v14 = vld [vmem:[%s288_s1 + $0x10] sm:$0xff]  ;;  %v18_v15 = vld [vmem:[%s288_s1 + $0x8] sm:$0xff] }
   0xa   :  { %152 = vmatpush3.msra.mxu0 %v28_v5  ;;  %v17_v16 = vld [vmem:[%s288_s1] sm:$0xff]  ;;  %s209_s1 = smov [#allocation3]  }
   0xb   :  { %153 = vmatprep.subr.mxu0 %v207_v1  ;;  %v16_v17 = vld [vmem:[%s287_s0] sm:$0x1]  ;;  %s118_s21 = sshll.u32 %s209_s1, 4  ;;  %s119_s21 = int_to_ptr.vmem [resolvable:$true] %s118_s21 }
   0xc   :  { %154 = vmatpush3.msra.mxu0 %v27_v6  ;;  %s185_s0 = scalar_lea.vmem %s119_s21, 16  ;;  %s189_s22 = scalar_lea.vmem %s119_s21, 32 }
   0xd   :  { %155 = vmatprep.subr.mxu0 %v207_v1  ;;  %p186_p0 = scmp.ne.s32.totalorder %s119_s21, %s185_s0  ;;  %p190_p1 = scmp.lt.s32.totalorder %s119_s21, %s119_s21 }
   0xe   :  { %156 = vmatpush3.msra.mxu0 %v26_v7  ;;  %p191_p2 = scmp.lt.s32.totalorder %s189_s22, %s185_s0 }
   0xf   :  { %157 = vmatprep.subr.mxu0 %v207_v1 }
  0x10   :  { %158 = vmatpush3.msra.mxu0 %v25_v8  ;;  %p192_p3 = por %p191_p2, %p190_p1 }
  0x11   :  { %159 = vmatprep.subr.mxu0 %v207_v1 }
  0x12   :  { %160 = vmatpush3.msra.mxu0 %v24_v9  ;;  %p193_p4 = pnand %p192_p3, %p186_p0 }
  0x13   :  { %161 = vmatprep.subr.mxu0 %v207_v1 }
  0x14   :  { %162 = vmatpush3.msra.mxu0 %v23_v10 }
  0x15   :  { %163 = vmatprep.subr.mxu0 %v207_v1 }
  0x16   :  { %164 = vmatpush3.msra.mxu0 %v22_v11 }
  0x17   :  { %165 = vmatprep.subr.mxu0 %v207_v1 }
  0x18   :  { %166 = vmatpush3.msra.mxu0 %v21_v12 }
  0x19   :  { %167 = vmatprep.subr.mxu0 %v207_v1 }
  0x1a   :  { %168 = vmatpush3.msra.mxu0 %v20_v13 }
  0x1b   :  { %169 = vmatprep.subr.mxu0 %v207_v1 }
  0x1c   :  { %170 = vmatpush3.msra.mxu0 %v19_v14 }
  0x1d   :  { %171 = vmatprep.subr.mxu0 %v207_v1 }
  0x1e   :  { %172 = vmatpush3.msra.mxu0 %v18_v15 }
  0x1f   :  { %173 = vmatprep.subr.mxu0 %v207_v1 }
  0x20   :  { %174 = vmatpush3.msra.mxu0 %v17_v16 }
  0x21   :  { %176 = vmatmul.mubr.f32.vlgmr.msra.gmra.mxu0 %v16_v17 }
  0xe1   :  { %v101_v19 = vpop.f32.mrf.mxu0 }
  0xe2   :  { %v102_v20 = vadd.f32 %v101_v19, %v34_v18 }
  0xe3   :  { %v177_v21 = vpop.f32.mrf.mxu0 }
  0xe4   :  { %v105_v22 = vsub.f32 0.0, %v102_v20 }
  0xe6   :  { %v106_v23 = vmul.f32 1.442695, %v105_v22 }
  0xe8   :  { %181 = vpow2.f32 %v106_v23 }
  0xf5   :  { %v182_v24 = vpop.eup %181 }
  0xf6   :  { %v108_v25 = vadd.f32 1.0, %v182_v24 }
  0xf8   :  { %183 = vrcp.f32 %v108_v25 }
 0x105   :  { %v184_v26 = vpop.eup %183 }
 0x106   :  { %111 = vst.msk [vmem:[#allocation3] sm:$0x1] %vm110_vm1, %v184_v26 }
 0x107   :  { %196 = shalt.err (!%p193_p4)
}
 0x108   :  { %121 = dma.vmem_to_hbm [thread:$0]  %s119_s21, 16, %s290_s3, [#allocation4]  }
 0x109   :  { %205 = dma.done.wait [#allocation4], 16  }
 0x10a   :  { %206 = vsyncadd [#allocation4], 4294967280 }
 0x10b   :  { %125 = vsyncpa [#allocation4], 1 }

</bundles_post_ra>
